<compile_context>
chip_gen: v7x
topology: tpu7x:2x2x1
jax: 0.10.0
libtpu: 0.0.40
codegen_flags: <defaults>
</compile_context>

<pallas_src>
import math
from functools import partial

import jax
import jax.numpy as jnp
from jax.experimental import pallas as pl
from jax.experimental.pallas import tpu as pltpu

LN_EPS = 1e-5  # nn.LayerNorm default


def _layernorm(v, g, b):
    mu = jnp.mean(v, axis=-1, keepdims=True)
    var = jnp.mean((v - mu) ** 2, axis=-1, keepdims=True)
    return (v - mu) * jax.lax.rsqrt(var + LN_EPS) * g + b


def _gelu_exact(x):
    # matches torch nn.GELU() (erf formulation)
    return 0.5 * x * (1.0 + jax.lax.erf(x * (1.0 / math.sqrt(2.0))))


# ---------------- kernels ----------------

def ln_qkv_kernel(x_ref, ln_g_ref, ln_b_ref, wqkv_ref, q_ref, k_ref, v_ref):
    """Row tile: h = LN(x); [q|k|v] = bf16(h) @ Wqkv (scale already folded into Wq)."""
    h = _layernorm(x_ref[...], ln_g_ref[...], ln_b_ref[...])
    qkv = jnp.dot(h.astype(jnp.bfloat16), wqkv_ref[...],
                  preferred_element_type=jnp.float32)           # (TM, 3*d) f32
    d = q_ref.shape[-1]
    q_ref[...] = qkv[:, :d].astype(q_ref.dtype)                 # bf16, pre-scaled
    k_ref[...] = qkv[:, d:2 * d].astype(k_ref.dtype)            # bf16
    v_ref[...] = qkv[:, 2 * d:].astype(v_ref.dtype)             # f32 (needed for v-skip)


def attn_post_kernel(q_ref, k_ref, v_ref, wproj_ref, bproj_ref,
                     ln2g_ref, ln2b_ref, w1_ref, b1_ref, w2_ref, b2_ref,
                     o_ref, *, tq):
    """One query tile vs. full per-batch K/V: attention + proj + v-skip + MLP."""
    q = q_ref[...]                                              # (tq, d) bf16
    k = k_ref[...]                                              # (N, d) bf16
    sc = jax.lax.dot_general(q, k, (((1,), (1,)), ((), ())),
                             preferred_element_type=jnp.float32)  # (tq, N) f32
    m = jnp.max(sc, axis=-1, keepdims=True)
    p = jnp.exp(sc - m)
    l = jnp.sum(p, axis=-1, keepdims=True)                      # (tq, 1)
    v_all = v_ref[...]                                          # (N, d) f32
    acc = jnp.dot(p.astype(jnp.bfloat16), v_all.astype(jnp.bfloat16),
                  preferred_element_type=jnp.float32)           # (tq, d)
    attn = acc / l                                              # exact softmax normalization

    a = jnp.dot(attn.astype(jnp.bfloat16), wproj_ref[...],
                preferred_element_type=jnp.float32) + bproj_ref[...]
    row0 = pl.multiple_of(pl.program_id(1) * tq, tq)
    xa = v_ref[pl.ds(row0, tq), :] + a                          # T2T v-skip connection

    y = _layernorm(xa, ln2g_ref[...], ln2b_ref[...])
    y = jnp.dot(y.astype(jnp.bfloat16), w1_ref[...],
                preferred_element_type=jnp.float32) + b1_ref[...]
    y = _gelu_exact(y)
    y = jnp.dot(y.astype(jnp.bfloat16), w2_ref[...],
                preferred_element_type=jnp.float32) + b2_ref[...]
    o_ref[...] = (xa + y).astype(o_ref.dtype)


def linear_kernel(x_ref, w_ref, b_ref, o_ref):
    o_ref[...] = (jnp.dot(x_ref[...].astype(jnp.bfloat16), w_ref[...],
                          preferred_element_type=jnp.float32)
                  + b_ref[...]).astype(o_ref.dtype)


# ---------------- VMEM / tiling helpers ----------------

_RESIDENT = pl.BlockSpec(memory_space=pltpu.MemorySpace.VMEM)  # whole-array, single-buffered


def _physical_vmem_bytes():
    try:
        return int(pltpu.get_tpu_info().vmem_capacity_bytes)
    except Exception:
        return 128 << 20  # v5e/v6e default; v7x will be detected when query works


def _vmem_limit(pipelined_bytes, resident_bytes, temp_bytes=0):
    # double-buffered grid blocks + resident weights + in-kernel temporaries,
    # with 2x headroom, capped at 3/4 of physical VMEM (48 MiB v7x, 96 MiB v5e/v6e).
    need = 2 * pipelined_bytes + resident_bytes + temp_bytes
    cap = (_physical_vmem_bytes() * 3) // 4
    return int(min(cap, max(2 * need, 16 << 20)))


def _pick_tile(n, target, align=8):
    """Largest multiple of `align` <= target that divides n (or n itself)."""
    if n <= target:
        return n
    t = (target // align) * align
    while t >= align:
        if n % t == 0:
            return t
        t -= align
    return n


def _nbytes(a):
    return int(a.size) * a.dtype.itemsize


# ---------------- wrappers ----------------

def token_transformer(x, params, *, q_tile=256, row_tile=1024):
    B, N, dim = x.shape
    d = params['wqkv'].shape[1] // 3          # in_dim (= token_dim)

    # --- stage A: LayerNorm + fused (pre-scaled) QKV projection, row-tiled ---
    rows = B * N
    tm = _pick_tile(rows, row_tile)
    x2 = x.reshape(rows, dim)
    a_resident = _nbytes(params['ln1g']) + _nbytes(params['ln1b']) + _nbytes(params['wqkv'])
    a_pipelined = tm * dim * 4 + tm * d * (2 + 2 + 4)
    a_temp = tm * max(dim, 3 * d) * 8
    q, k, v = pl.pallas_call(
        ln_qkv_kernel,
        out_shape=(jax.ShapeDtypeStruct((rows, d), jnp.bfloat16),   # q (scale folded in)
                   jax.ShapeDtypeStruct((rows, d), jnp.bfloat16),   # k
                   jax.ShapeDtypeStruct((rows, d), jnp.float32)),   # v (f32 for the v-skip)
        grid=(rows // tm,),
        in_specs=[pl.BlockSpec((tm, dim), lambda i: (i, 0)),
                  _RESIDENT, _RESIDENT, _RESIDENT],
        out_specs=(pl.BlockSpec((tm, d), lambda i: (i, 0)),
                   pl.BlockSpec((tm, d), lambda i: (i, 0)),
                   pl.BlockSpec((tm, d), lambda i: (i, 0))),
        compiler_params=pltpu.CompilerParams(
            dimension_semantics=("parallel",),
            vmem_limit_bytes=_vmem_limit(a_pipelined, a_resident, a_temp)),
    )(x2, params['ln1g'], params['ln1b'], params['wqkv'])
    q = q.reshape(B, N, d)
    k = k.reshape(B, N, d)
    v = v.reshape(B, N, d)

    # --- stage B: query-tiled attention + proj + v-skip + MLP ---
    tq = _pick_tile(N, q_tile)
    wlist = [params[n] for n in ('wproj', 'bproj', 'ln2g', 'ln2b',
                                 'w1', 'b1', 'w2', 'b2')]
    b_resident = sum(_nbytes(w) for w in wlist)
    b_pipelined = (tq * d * 2      # q tile (bf16)
                   + N * d * 2     # full K (bf16), resident across q tiles
                   + N * d * 4     # full V (f32)
                   + tq * d * 4)   # output tile (f32)
    b_temp = 3 * tq * N * 4        # score / exp temporaries
    out = pl.pallas_call(
        partial(attn_post_kernel, tq=tq),
        out_shape=jax.ShapeDtypeStruct((B, N, d), x.dtype),
        grid=(B, N // tq),
        in_specs=[pl.BlockSpec((None, tq, d), lambda b, i: (b, i, 0)),
                  pl.BlockSpec((None, N, d), lambda b, i: (b, 0, 0)),
                  pl.BlockSpec((None, N, d), lambda b, i: (b, 0, 0))]
                 + [_RESIDENT] * len(wlist),
        out_specs=pl.BlockSpec((None, tq, d), lambda b, i: (b, i, 0)),
        compiler_params=pltpu.CompilerParams(
            dimension_semantics=("parallel", "parallel"),
            vmem_limit_bytes=_vmem_limit(b_pipelined, b_resident, b_temp)),
    )(q, k, v, *wlist)
    return out


def linear(x, w, b, *, row_tile=1024):
    B, L, cin = x.shape
    cout = w.shape[1]
    rows = B * L
    tm = _pick_tile(rows, row_tile)
    x2 = x.reshape(rows, cin)
    resident = _nbytes(w) + _nbytes(b)
    pipelined = tm * cin * 4 + tm * cout * 4
    out = pl.pallas_call(
        linear_kernel,
        out_shape=jax.ShapeDtypeStruct((rows, cout), x.dtype),
        grid=(rows // tm,),
        in_specs=[pl.BlockSpec((tm, cin), lambda i: (i, 0)),
                  _RESIDENT, _RESIDENT],
        out_specs=pl.BlockSpec((tm, cout), lambda i: (i, 0)),
        compiler_params=pltpu.CompilerParams(
            dimension_semantics=("parallel",),
            vmem_limit_bytes=_vmem_limit(pipelined, resident,
                                         temp_bytes=tm * (cin * 2 + cout * 4))),
    )(x2, w, b)
    return out.reshape(B, L, cout)


def _unfold(x, k, s, p):
    """nn.Unfold(kernel=k, stride=s, padding=p) followed by .transpose(1, 2).

    Pure strided data movement done in the JAX wrapper. Channel ordering matches
    PyTorch Unfold: feature index = c * k*k + ki * k + kj. Returns (B, L, C*k*k).
    """
    # TODO(synk): fusing this gather (and the fold transpose below) into the kernel
    # DMAs would remove an HBM round trip between pallas_calls.
    B, C, H, W = x.shape
    Ho = (H + 2 * p - k) // s + 1
    Wo = (W + 2 * p - k) // s + 1
    xp = jnp.pad(x, ((0, 0), (0, 0), (p, p), (p, p)))
    cols = []
    for ki in range(k):
        for kj in range(k):
            cols.append(xp[:, :, ki:ki + s * (Ho - 1) + 1:s,
                            kj:kj + s * (Wo - 1) + 1:s])   # (B, C, Ho, Wo)
    patches = jnp.stack(cols, axis=2)                      # (B, C, k*k, Ho, Wo)
    patches = patches.reshape(B, C * k * k, Ho * Wo)
    return patches.transpose(0, 2, 1)                      # (B, L, C*k*k)


def _tokens_to_image(x):
    B, L, C = x.shape
    h = int(math.isqrt(L))
    return x.transpose(0, 2, 1).reshape(B, C, h, h)


def t2t_forward(x, params):
    # softsplit0 + attention1
    t = _unfold(x, 7, 4, 2)
    t = token_transformer(t, params['attn1'])
    # fold back to image; softsplit1 + attention2
    t = _unfold(_tokens_to_image(t), 3, 2, 1)
    t = token_transformer(t, params['attn2'])
    # fold back to image; softsplit2 + project
    # TODO(synk): the reference calls `x.tranpose(1, 2)` (typo); we implement the intended transpose.
    t = _unfold(_tokens_to_image(t), 3, 2, 1)
    return linear(t, params['proj_w'], params['proj_b'])


# ---------------- deterministic parameter init (kernel-ready layout) ----------------

def _xavier_uniform(key, fan_in, fan_out):
    a = math.sqrt(6.0 / (fan_in + fan_out))
    # stored pre-transposed: (in_features, out_features)
    return jax.random.uniform(key, (fan_in, fan_out), jnp.float32, -a, a)


def _init_token_transformer(key, dim, in_dim):
    ks = jax.random.split(key, 6)
    hidden = in_dim                      # mlp_ratio = 1.0
    scale = float(dim) ** -0.5           # num_heads=1 -> head_dim = dim
    wq = _xavier_uniform(ks[0], dim, in_dim) * scale   # softmax scale folded into Wq
    wk = _xavier_uniform(ks[1], dim, in_dim)
    wv = _xavier_uniform(ks[2], dim, in_dim)
    return {
        'ln1g': jnp.ones((1, dim), jnp.float32),
        'ln1b': jnp.zeros((1, dim), jnp.float32),
        # fused, pre-transposed (in, 3*out), bf16 for the MXU
        'wqkv': jnp.concatenate([wq, wk, wv], axis=1).astype(jnp.bfloat16),
        'wproj': _xavier_uniform(ks[3], in_dim, in_dim).astype(jnp.bfloat16),
        'bproj': jnp.zeros((1, in_dim), jnp.float32),
        'ln2g': jnp.ones((1, in_dim), jnp.float32),
        'ln2b': jnp.zeros((1, in_dim), jnp.float32),
        'w1': _xavier_uniform(ks[4], in_dim, hidden).astype(jnp.bfloat16),
        'b1': jnp.zeros((1, hidden), jnp.float32),
        'w2': _xavier_uniform(ks[5], hidden, in_dim).astype(jnp.bfloat16),
        'b2': jnp.zeros((1, in_dim), jnp.float32),
    }


def init_params(key, in_channels, token_dim, embed_dim):
    k1, k2, k3 = jax.random.split(key, 3)
    dim1 = in_channels * 7 * 7            # softsplit0 token length
    dim2 = token_dim * 3 * 3              # softsplit1/2 token length
    return {
        'attn1': _init_token_transformer(k1, dim1, token_dim),
        'attn2': _init_token_transformer(k2, dim2, token_dim),
        'proj_w': _xavier_uniform(k3, dim2, embed_dim).astype(jnp.bfloat16),
        'proj_b': jnp.zeros((1, embed_dim), jnp.float32),
    }


if __name__ == "__main__":
    B, C, IMG = 2, 3, 32
    TOKEN_DIM, EMBED_DIM = 64, 128
    key = jax.random.PRNGKey(0)
    kx, kp = jax.random.split(key)
    x = jax.random.normal(kx, (B, C, IMG, IMG), jnp.float32)
    params = init_params(kp, C, TOKEN_DIM, EMBED_DIM)

    out = t2t_forward(x, params)
    out = jax.block_until_ready(out)

    num_patches = (IMG // 16) * (IMG // 16)
    assert out.shape == (B, num_patches, EMBED_DIM), out.shape
    assert out.dtype == jnp.float32
    assert bool(jnp.all(jnp.isfinite(out)))
    print("KERNEL_OK")
</pallas_src>

<mosaic_0001>
module attributes {stable_mosaic.version = 11 : i64} {
  func.func @ln_qkv_kernel(%arg0: i32, %arg1: memref<128x147xf32, #tpu.memory_space<vmem>>, %arg2: memref<1x147xf32, #tpu.memory_space<vmem>>, %arg3: memref<1x147xf32, #tpu.memory_space<vmem>>, %arg4: memref<147x192xbf16, #tpu.memory_space<vmem>>, %arg5: memref<128x64xbf16, #tpu.memory_space<vmem>>, %arg6: memref<128x64xbf16, #tpu.memory_space<vmem>>, %arg7: memref<128x64xf32, #tpu.memory_space<vmem>>) attributes {dimension_semantics = [#tpu.dimension_semantics<parallel>], iteration_bounds = array<i64: 1>, scalar_prefetch = 0 : i64, scratch_operands = 0 : i64, tpu.core_type = #tpu.core_type<tc>, window_params = [{transform_indices = @transform_0, window_bounds = array<i64: 128, 147>}, {pipeline_mode = #tpu.pipeline_mode<synchronous>, transform_indices = @transform_1, window_bounds = array<i64: 1, 147>}, {pipeline_mode = #tpu.pipeline_mode<synchronous>, transform_indices = @transform_2, window_bounds = array<i64: 1, 147>}, {pipeline_mode = #tpu.pipeline_mode<synchronous>, transform_indices = @transform_3, window_bounds = array<i64: 147, 192>}, {transform_indices = @transform_4, window_bounds = array<i64: 128, 64>}, {transform_indices = @transform_5, window_bounds = array<i64: 128, 64>}, {transform_indices = @transform_6, window_bounds = array<i64: 128, 64>}]} {
    %c0 = arith.constant 0 : index
    %c0_0 = arith.constant 0 : index
    %0 = vector.load %arg1[%c0, %c0_0] : memref<128x147xf32, #tpu.memory_space<vmem>>, vector<128x147xf32>
    %c0_1 = arith.constant 0 : index
    %c0_2 = arith.constant 0 : index
    %1 = vector.load %arg2[%c0_1, %c0_2] : memref<1x147xf32, #tpu.memory_space<vmem>>, vector<1x147xf32>
    %c0_3 = arith.constant 0 : index
    %c0_4 = arith.constant 0 : index
    %2 = vector.load %arg3[%c0_3, %c0_4] : memref<1x147xf32, #tpu.memory_space<vmem>>, vector<1x147xf32>
    %cst = arith.constant dense<0.000000e+00> : vector<128xf32>
    %3 = vector.multi_reduction <add>, %0, %cst [1] : vector<128x147xf32> to vector<128xf32>
    %4 = vector.shape_cast %3 : vector<128xf32> to vector<128x1xf32>
    %cst_5 = arith.constant 1.470000e+02 : f32
    %5 = vector.broadcast %cst_5 : f32 to vector<128x1xf32>
    %6 = arith.divf %4, %5 : vector<128x1xf32>
    %7 = vector.broadcast %6 : vector<128x1xf32> to vector<128x147xf32>
    %8 = arith.subf %0, %7 : vector<128x147xf32>
    %9 = arith.mulf %8, %8 : vector<128x147xf32>
    %cst_6 = arith.constant dense<0.000000e+00> : vector<128xf32>
    %10 = vector.multi_reduction <add>, %9, %cst_6 [1] : vector<128x147xf32> to vector<128xf32>
    %11 = vector.shape_cast %10 : vector<128xf32> to vector<128x1xf32>
    %cst_7 = arith.constant 1.470000e+02 : f32
    %12 = vector.broadcast %cst_7 : f32 to vector<128x1xf32>
    %13 = arith.divf %11, %12 : vector<128x1xf32>
    %14 = vector.broadcast %6 : vector<128x1xf32> to vector<128x147xf32>
    %15 = arith.subf %0, %14 : vector<128x147xf32>
    %cst_8 = arith.constant 9.99999974E-6 : f32
    %16 = vector.broadcast %cst_8 : f32 to vector<128x1xf32>
    %17 = arith.addf %13, %16 : vector<128x1xf32>
    %18 = math.rsqrt %17 : vector<128x1xf32>
    %19 = vector.broadcast %18 : vector<128x1xf32> to vector<128x147xf32>
    %20 = arith.mulf %15, %19 : vector<128x147xf32>
    %21 = vector.broadcast %1 : vector<1x147xf32> to vector<128x147xf32>
    %22 = arith.mulf %20, %21 : vector<128x147xf32>
    %23 = vector.broadcast %2 : vector<1x147xf32> to vector<128x147xf32>
    %24 = arith.addf %22, %23 : vector<128x147xf32>
    %25 = arith.truncf %24 : vector<128x147xf32> to vector<128x147xbf16>
    %c0_9 = arith.constant 0 : index
    %c0_10 = arith.constant 0 : index
    %26 = vector.load %arg4[%c0_9, %c0_10] : memref<147x192xbf16, #tpu.memory_space<vmem>>, vector<147x192xbf16>
    %cst_11 = arith.constant dense<0.000000e+00> : vector<128x192xf32>
    %27 = tpu.matmul %25, %26, %cst_11 {dimension_numbers = #tpu.dot_dimension_numbers<[1], [0], [0], [1], [0, 0, 1, 1], [], []>} : vector<128x147xbf16>, vector<147x192xbf16>, vector<128x192xf32> -> vector<128x192xf32>
    %28 = vector.extract_strided_slice %27 {offsets = [0, 0], sizes = [128, 64], strides = [1, 1]} : vector<128x192xf32> to vector<128x64xf32>
    %29 = arith.truncf %28 : vector<128x64xf32> to vector<128x64xbf16>
    %c0_12 = arith.constant 0 : index
    %c0_13 = arith.constant 0 : index
    %30 = vector.load %arg5[%c0_12, %c0_13] : memref<128x64xbf16, #tpu.memory_space<vmem>>, vector<128x64xbf16>
    tpu.vector_store %arg5[%c0_12, %c0_13], %29 {strides = array<i32>} : memref<128x64xbf16, #tpu.memory_space<vmem>>, vector<128x64xbf16>,
    %31 = vector.extract_strided_slice %27 {offsets = [0, 64], sizes = [128, 64], strides = [1, 1]} : vector<128x192xf32> to vector<128x64xf32>
    %32 = arith.truncf %31 : vector<128x64xf32> to vector<128x64xbf16>
    %c0_14 = arith.constant 0 : index
    %c0_15 = arith.constant 0 : index
    %33 = vector.load %arg6[%c0_14, %c0_15] : memref<128x64xbf16, #tpu.memory_space<vmem>>, vector<128x64xbf16>
    tpu.vector_store %arg6[%c0_14, %c0_15], %32 {strides = array<i32>} : memref<128x64xbf16, #tpu.memory_space<vmem>>, vector<128x64xbf16>,
    %34 = vector.extract_strided_slice %27 {offsets = [0, 128], sizes = [128, 64], strides = [1, 1]} : vector<128x192xf32> to vector<128x64xf32>
    %c0_16 = arith.constant 0 : index
    %c0_17 = arith.constant 0 : index
    %35 = vector.load %arg7[%c0_16, %c0_17] : memref<128x64xf32, #tpu.memory_space<vmem>>, vector<128x64xf32>
    tpu.vector_store %arg7[%c0_16, %c0_17], %34 {strides = array<i32>} : memref<128x64xf32, #tpu.memory_space<vmem>>, vector<128x64xf32>,
    return
  }
  func.func @transform_0(%arg0: i32) -> (i32, i32) {
    %c0_i32 = arith.constant 0 : i32
    %c0_i32_0 = arith.constant 0 : i32
    return %arg0, %c0_i32 : i32, i32
  }
  func.func @transform_1(%arg0: i32) -> (i32, i32) {
    %c0_i32 = arith.constant 0 : i32
    %c0_i32_0 = arith.constant 0 : i32
    %c0_i32_1 = arith.constant 0 : i32
    return %c0_i32, %c0_i32_0 : i32, i32
  }
  func.func @transform_2(%arg0: i32) -> (i32, i32) {
    %c0_i32 = arith.constant 0 : i32
    %c0_i32_0 = arith.constant 0 : i32
    %c0_i32_1 = arith.constant 0 : i32
    return %c0_i32, %c0_i32_0 : i32, i32
  }
  func.func @transform_3(%arg0: i32) -> (i32, i32) {
    %c0_i32 = arith.constant 0 : i32
    %c0_i32_0 = arith.constant 0 : i32
    %c0_i32_1 = arith.constant 0 : i32
    return %c0_i32, %c0_i32_0 : i32, i32
  }
  func.func @transform_4(%arg0: i32) -> (i32, i32) {
    %c0_i32 = arith.constant 0 : i32
    %c0_i32_0 = arith.constant 0 : i32
    return %arg0, %c0_i32 : i32, i32
  }
  func.func @transform_5(%arg0: i32) -> (i32, i32) {
    %c0_i32 = arith.constant 0 : i32
    %c0_i32_0 = arith.constant 0 : i32
    return %arg0, %c0_i32 : i32, i32
  }
  func.func @transform_6(%arg0: i32) -> (i32, i32) {
    %c0_i32 = arith.constant 0 : i32
    %c0_i32_0 = arith.constant 0 : i32
    return %arg0, %c0_i32 : i32, i32
  }
}

</mosaic_0001>

<bundles_post_ra>
// kernel: tpu_custom_call.1
= control target key start
LH: loop header
LB: loop body
LE: loop exit
PB: predicated region body
PF: predicated region fallthrough
CT: control target
= control target key end

     0   :  { %vm55_vm0 = vcmask 154624   ;;  %vm585_vm1 = vcmask 1040384   ;;  %vm586_vm2 = vcmask 1041408   ;;  %vm853_vm3 = vcmask 523264   ;;  %s1026_s30 = smov 64   ;;  %s1829_s0 = inlined_call_operand.vmem [shape: f32[128,147], index: 0, kind: input, shape index: {}]   ;;  %s1830_s3 = inlined_call_operand.vmem [shape: bf16[147,192], index: 3, kind: input, shape index: {}]   ;;  %s1831_s1 = inlined_call_operand.vmem [shape: f32[1,147], index: 1, kind: input, shape index: {}]   ;;  %s1832_s2 = inlined_call_operand.vmem [shape: f32[1,147], index: 2, kind: input, shape index: {}]   ;;  %s1833_s6 = inlined_call_operand.vmem [shape: f32[128,64], index: 6, kind: output, shape index: {2}]   ;;  %s1834_s4 = inlined_call_operand.vmem [shape: bf16[128,64], index: 4, kind: output, shape index: {0}]   ;;  %s1835_s5 = inlined_call_operand.vmem [shape: bf16[128,64], index: 5, kind: output, shape index: {1}]  }
   0x1   :  { %v1065_v0 = vld [vmem:[%s1829_s0] sm:$0xff]  ;;  %v1070_v1 = vld [vmem:[%s1829_s0 + $0x8] sm:$0xff]  ;;  %v1087_v5 = vld [vmem:[%s1829_s0 + $0x10] sm:$0xff]  ;;  %vm772_vm4 = vcmask 519168  }
   0x2   :  { %v1075_v2 = vld [vmem:[%s1829_s0 + $0x80] sm:$0xff]  ;;  %v56_v3 = vsel %vm55_vm0, %v1070_v1, 0.0  ;;  %v1082_v4 = vld [vmem:[%s1829_s0 + $0x88] sm:$0xff]  ;;  %v1092_v6 = vld [vmem:[%s1829_s0 + $0x18] sm:$0xff] }
   0x3   :  { %v57_v7 = vadd.f32 %v56_v3, %v1065_v0  ;;  %v88_v8 = vsel %vm55_vm0, %v1082_v4, 0.0  ;;  %v60_v9 = vsel %vm55_vm0, %v1092_v6, 0.0  ;;  %v1102_v10 = vld [vmem:[%s1829_s0 + $0x90] sm:$0xff]  ;;  %v1107_v11 = vld [vmem:[%s1829_s0 + $0x98] sm:$0xff]  ;;  %v1115_v14 = vld [vmem:[%s1829_s0 + $0x28] sm:$0xff] }
   0x4   :  { %v89_v12 = vadd.f32 %v88_v8, %v1075_v2  ;;  %v92_v13 = vsel %vm55_vm0, %v1107_v11, 0.0  ;;  %v1120_v15 = vld [vmem:[%s1829_s0 + $0x38] sm:$0xff]  ;;  %v61_v16 = vadd.f32 %v60_v9, %v1087_v5  ;;  %v1127_v18 = vld [vmem:[%s1829_s0 + $0x20] sm:$0xff]  ;;  %v64_v19 = vsel %vm55_vm0, %v1115_v14, 0.0  ;;  %v1134_v20 = vld [vmem:[%s1829_s0 + $0x30] sm:$0xff] }
   0x5   :  { %58 = vadd.xlane.f32.xlu0 %v57_v7  ;;  %v93_v17 = vadd.f32 %v92_v13, %v1102_v10  ;;  %v68_v21 = vsel %vm55_vm0, %v1120_v15, 0.0  ;;  %v1141_v22 = vld [vmem:[%s1829_s0 + $0xa8] sm:$0xff]  ;;  %v1146_v23 = vld [vmem:[%s1829_s0 + $0xb8] sm:$0xff]  ;;  %v65_v24 = vadd.f32 %v64_v19, %v1127_v18  ;;  %v1153_v26 = vld [vmem:[%s1829_s0 + $0xa0] sm:$0xff] }
   0x6   :  { %90 = vadd.xlane.f32.xlu1 %v89_v12  ;;  %v69_v25 = vadd.f32 %v68_v21, %v1134_v20  ;;  %v96_v27 = vsel %vm55_vm0, %v1141_v22, 0.0  ;;  %v1160_v28 = vld [vmem:[%s1829_s0 + $0xb0] sm:$0xff]  ;;  %v100_v29 = vsel %vm55_vm0, %v1146_v23, 0.0  ;;  %v1167_v30 = vld [vmem:[%s1829_s0 + $0x48] sm:$0xff]  ;;  %v1172_v31 = vld [vmem:[%s1829_s0 + $0x58] sm:$0xff] }
   0x7   :  { %v97_v32 = vadd.f32 %v96_v27, %v1153_v26  ;;  %v101_v33 = vadd.f32 %v100_v29, %v1160_v28  ;;  %v1179_v34 = vld [vmem:[%s1829_s0 + $0x40] sm:$0xff]  ;;  %v72_v35 = vsel %vm55_vm0, %v1167_v30, 0.0  ;;  %v1186_v36 = vld [vmem:[%s1829_s0 + $0x50] sm:$0xff]  ;;  %v76_v37 = vsel %vm55_vm0, %v1172_v31, 0.0  ;;  %v1193_v38 = vld [vmem:[%s1829_s0 + $0xc8] sm:$0xff] }
   0x8   :  { %v1198_v39 = vld [vmem:[%s1829_s0 + $0xd8] sm:$0xff]  ;;  %v73_v40 = vadd.f32 %v72_v35, %v1179_v34  ;;  %v77_v41 = vadd.f32 %v76_v37, %v1186_v36  ;;  %v1205_v42 = vld [vmem:[%s1829_s0 + $0xc0] sm:$0xff]  ;;  %v104_v43 = vsel %vm55_vm0, %v1193_v38, 0.0  ;;  %v1212_v44 = vld [vmem:[%s1829_s0 + $0xd0] sm:$0xff] }
   0x9   :  { %62 = vadd.xlane.f32.xlu0 %v61_v16  ;;  %v108_v45 = vsel %vm55_vm0, %v1198_v39, 0.0  ;;  %v1219_v46 = vld [vmem:[%s1829_s0 + $0x68] sm:$0xff]  ;;  %v1224_v47 = vld [vmem:[%s1829_s0 + $0x78] sm:$0xff]  ;;  %v105_v48 = vadd.f32 %v104_v43, %v1205_v42  ;;  %v1231_v50 = vld [vmem:[%s1829_s0 + $0x60] sm:$0xff] }
   0xa   :  { %94 = vadd.xlane.f32.xlu1 %v93_v17  ;;  %v109_v49 = vadd.f32 %v108_v45, %v1212_v44  ;;  %v80_v51 = vsel %vm55_vm0, %v1219_v46, 0.0  ;;  %v1238_v52 = vld [vmem:[%s1829_s0 + $0x70] sm:$0xff]  ;;  %v84_v53 = vsel %vm55_vm0, %v1224_v47, 0.0  ;;  %v1245_v54 = vld [vmem:[%s1829_s0 + $0xe8] sm:$0xff]  ;;  %v1250_v55 = vld [vmem:[%s1829_s0 + $0xf8] sm:$0xff] }
   0xb   :  { %v81_v56 = vadd.f32 %v80_v51, %v1231_v50  ;;  %v85_v57 = vadd.f32 %v84_v53, %v1238_v52  ;;  %v1257_v58 = vld [vmem:[%s1829_s0 + $0xe0] sm:$0xff]  ;;  %v112_v59 = vsel %vm55_vm0, %v1245_v54, 0.0  ;;  %v1264_v60 = vld [vmem:[%s1829_s0 + $0xf0] sm:$0xff]  ;;  %v116_v61 = vsel %vm55_vm0, %v1250_v55, 0.0 }
   0xc   :  { %v113_v62 = vadd.f32 %v112_v59, %v1257_v58  ;;  %v117_v63 = vadd.f32 %v116_v61, %v1264_v60  ;;  %v964_v3 = vld [vmem:[%s1830_s3 + $0x4] ss:$8 sps:$4 sm:$0xff]   ;;  %v966_v7 = vld [vmem:[%s1830_s3] ss:$8 sps:$4 sm:$0xff]   ;;  %v967_v8 = vld [vmem:[%s1830_s3 + $0x14] ss:$8 sps:$4 sm:$0xff]  }
   0xd   :  { %66 = vadd.xlane.f32.xlu0 %v65_v24  ;;  %595 = vmatprep.subr.bf16.mxu0 %v964_v3  ;;  %v969_v9 = vld [vmem:[%s1830_s3 + $0x10] ss:$8 sps:$4 sm:$0xff]   ;;  %v970_v12 = vld [vmem:[%s1830_s3 + $0x24] ss:$8 sps:$4 sm:$0xff]   ;;  %v972_v13 = vld [vmem:[%s1830_s3 + $0x20] ss:$8 sps:$4 sm:$0xff]  }
   0xe   :  { %70 = vadd.xlane.f32.xlu1 %v69_v25  ;;  %942 = vmatprep.subr.bf16.mxu1 %v964_v3 }
   0xf   :  { %596 = vmatpush1.bf16.msra.mxu0 %v966_v7  ;;  %952 = vmatpush1.bf16.msra.mxu1 %v966_v7 }
  0x10   :  { %597 = vmatprep.subr.bf16.mxu0 %v967_v8  ;;  %943 = vmatprep.subr.bf16.mxu1 %v967_v8 }
  0x11   :  { %98 = vadd.xlane.f32.xlu0 %v97_v32 }
  0x12   :  { %102 = vadd.xlane.f32.xlu1 %v101_v33 }
  0x13   :  { %598 = vmatpush1.bf16.msra.mxu0 %v969_v9  ;;  %953 = vmatpush1.bf16.msra.mxu1 %v969_v9 }
  0x14   :  { %599 = vmatprep.subr.bf16.mxu0 %v970_v12  ;;  %944 = vmatprep.subr.bf16.mxu1 %v970_v12 }
  0x15   :  { %74 = vadd.xlane.f32.xlu0 %v73_v40 }
  0x16   :  { %78 = vadd.xlane.f32.xlu1 %v77_v41 }
  0x17   :  { %600 = vmatpush1.bf16.msra.mxu0 %v972_v13  ;;  %954 = vmatpush1.bf16.msra.mxu1 %v972_v13 }
  0x19   :  { %106 = vadd.xlane.f32.xlu0 %v105_v48 }
  0x1a   :  { %110 = vadd.xlane.f32.xlu1 %v109_v49 }
  0x1d   :  { %82 = vadd.xlane.f32.xlu0 %v81_v56 }
  0x1e   :  { %86 = vadd.xlane.f32.xlu1 %v85_v57 }
  0x21   :  { %114 = vadd.xlane.f32.xlu0 %v113_v62 }
  0x22   :  { %118 = vadd.xlane.f32.xlu1 %v117_v63 }
  0x92   :  { %v59_v16 = vpop.xlane.xlu0 %58 }
  0x93   :  { %v121_v17 = vmul.f32 0.006802721, %v59_v16  ;;  %v91_v19 = vpop.xlane.xlu1 %90 }
  0x94   :  { %v129_v21 = vmul.f32 0.006802721, %v91_v19 }
  0x95   :  { %v1289_v24 = vsub.f32 %v1065_v0, %v121_v17  ;;  %v1292_v25 = vsub.f32 %v1070_v1, %v121_v17 }
  0x96   :  { %v1295_v27 = vsub.f32 %v1075_v2, %v129_v21  ;;  %v1298_v29 = vsub.f32 %v1082_v4, %v129_v21  ;;  %v63_v32 = vpop.xlane.xlu0 %62 }
  0x97   :  { %v122_v33 = vmul.f32 0.006802721, %v63_v32  ;;  %v95_v35 = vpop.xlane.xlu1 %94  ;;  %v169_v37 = vmul.f32 %v1289_v24, %v1289_v24  ;;  %v170_v40 = vmul.f32 %v1292_v25, %v1292_v25 }
  0x98   :  { %v130_v0 = vmul.f32 0.006802721, %v95_v35  ;;  %v185_v1 = vmul.f32 %v1295_v27, %v1295_v27  ;;  %v186_v2 = vmul.f32 %v1298_v29, %v1298_v29 }
  0x99   :  { %v1309_v41 = vsub.f32 %v1087_v5, %v122_v33  ;;  %v1312_v4 = vsub.f32 %v1092_v6, %v122_v33  ;;  %v201_v43 = vsel %vm55_vm0, %v170_v40, 0.0 }
  0x9a   :  { %v1316_v45 = vsub.f32 %v1102_v10, %v130_v0  ;;  %v1319_v48 = vsub.f32 %v1107_v11, %v130_v0  ;;  %v67_v49 = vpop.xlane.xlu0 %66  ;;  %v202_v51 = vadd.f32 %v201_v43, %v169_v37  ;;  %v233_v53 = vsel %vm55_vm0, %v186_v2, 0.0 }
  0x9b   :  { %v123_v56 = vmul.f32 0.006802721, %v67_v49  ;;  %v71_v57 = vpop.xlane.xlu1 %70  ;;  %v171_v5 = vmul.f32 %v1309_v41, %v1309_v41  ;;  %v172_v6 = vmul.f32 %v1312_v4, %v1312_v4  ;;  %v234_v61 = vadd.f32 %v233_v53, %v185_v1 }
  0x9c   :  { %203 = vadd.xlane.f32.xlu0 %v202_v51  ;;  %v124_v59 = vmul.f32 0.006802721, %v71_v57  ;;  %v187_v10 = vmul.f32 %v1316_v45, %v1316_v45  ;;  %v188_v11 = vmul.f32 %v1319_v48, %v1319_v48 }
  0x9d   :  { %v1331_v62 = vsub.f32 %v1127_v18, %v123_v56  ;;  %v1334_v63 = vsub.f32 %v1115_v14, %v123_v56  ;;  %v205_v3 = vsel %vm55_vm0, %v172_v6, 0.0 }
  0x9e   :  { %v1338_v7 = vsub.f32 %v1134_v20, %v124_v59  ;;  %v1341_v8 = vsub.f32 %v1120_v15, %v124_v59  ;;  %v99_v9 = vpop.xlane.xlu0 %98  ;;  %v206_v12 = vadd.f32 %v205_v3, %v171_v5  ;;  %v237_v13 = vsel %vm55_vm0, %v188_v11, 0.0 }
  0x9f   :  { %v131_v16 = vmul.f32 0.006802721, %v99_v9  ;;  %v103_v17 = vpop.xlane.xlu1 %102  ;;  %v173_v18 = vmul.f32 %v1331_v62, %v1331_v62  ;;  %v174_v14 = vmul.f32 %v1334_v63, %v1334_v63  ;;  %v238_v20 = vadd.f32 %v237_v13, %v187_v10 }
  0xa0   :  { %235 = vadd.xlane.f32.xlu0 %v234_v61  ;;  %207 = vadd.xlane.f32.xlu1 %v206_v12  ;;  %v132_v19 = vmul.f32 0.006802721, %v103_v17  ;;  %v175_v15 = vmul.f32 %v1338_v7, %v1338_v7  ;;  %v176_v21 = vmul.f32 %v1341_v8, %v1341_v8 }
  0xa1   :  { %v1353_v32 = vsub.f32 %v1153_v26, %v131_v16  ;;  %v1356_v33 = vsub.f32 %v1141_v22, %v131_v16  ;;  %v209_v35 = vsel %vm55_vm0, %v174_v14, 0.0  ;;  %v973_v16 = vld [vmem:[%s1830_s3 + $0x34] ss:$8 sps:$4 sm:$0xff]  }
  0xa2   :  { %v1360_v37 = vsub.f32 %v1160_v28, %v132_v19  ;;  %v1363_v40 = vsub.f32 %v1146_v23, %v132_v19  ;;  %v75_v0 = vpop.xlane.xlu0 %74  ;;  %v210_v1 = vadd.f32 %v209_v35, %v173_v18  ;;  %v213_v2 = vsel %vm55_vm0, %v176_v21, 0.0  ;;  %v975_v19 = vld [vmem:[%s1830_s3 + $0x30] ss:$8 sps:$4 sm:$0xff]   ;;  %601 = vmatprep.subr.bf16.mxu0 %v973_v16  ;;  %945 = vmatprep.subr.bf16.mxu1 %v973_v16 }
  0xa3   :  { %v125_v43 = vmul.f32 0.006802721, %v75_v0  ;;  %v79_v49 = vpop.xlane.xlu1 %78  ;;  %v189_v26 = vmul.f32 %v1353_v32, %v1353_v32  ;;  %v190_v22 = vmul.f32 %v1356_v33, %v1356_v33  ;;  %v214_v28 = vadd.f32 %v213_v2, %v175_v15  ;;  %602 = vmatpush1.bf16.msra.mxu0 %v975_v19  ;;  %955 = vmatpush1.bf16.msra.mxu1 %v975_v19 }
  0xa4   :  { %239 = vadd.xlane.f32.xlu1 %v238_v20  ;;  %211 = vadd.xlane.f32.xlu0 %v210_v1  ;;  %v126_v51 = vmul.f32 0.006802721, %v79_v49  ;;  %v191_v23 = vmul.f32 %v1360_v37, %v1360_v37  ;;  %v192_v53 = vmul.f32 %v1363_v40, %v1363_v40 }
  0xa5   :  { %v1375_v56 = vsub.f32 %v1179_v34, %v125_v43  ;;  %v1378_v57 = vsub.f32 %v1167_v30, %v125_v43  ;;  %v241_v5 = vsel %vm55_vm0, %v190_v22, 0.0 }
  0xa6   :  { %v1382_v6 = vsub.f32 %v1186_v36, %v126_v51  ;;  %v1385_v59 = vsub.f32 %v1172_v31, %v126_v51  ;;  %v107_v61 = vpop.xlane.xlu0 %106  ;;  %v242_v10 = vadd.f32 %v241_v5, %v189_v26  ;;  %v245_v11 = vsel %vm55_vm0, %v192_v53, 0.0 }
  0xa7   :  { %v133_v3 = vmul.f32 0.006802721, %v107_v61  ;;  %v111_v9 = vpop.xlane.xlu1 %110  ;;  %v177_v34 = vmul.f32 %v1375_v56, %v1375_v56  ;;  %v178_v30 = vmul.f32 %v1378_v57, %v1378_v57  ;;  %v246_v36 = vadd.f32 %v245_v11, %v191_v23 }
  0xa8   :  { %215 = vadd.xlane.f32.xlu1 %v214_v28  ;;  %243 = vadd.xlane.f32.xlu0 %v242_v10  ;;  %v134_v12 = vmul.f32 0.006802721, %v111_v9  ;;  %v179_v31 = vmul.f32 %v1382_v6, %v1382_v6  ;;  %v180_v13 = vmul.f32 %v1385_v59, %v1385_v59  ;;  %v976_v28 = vld [vmem:[%s1830_s3 + $0x44] ss:$8 sps:$4 sm:$0xff]  }
  0xa9   :  { %v1400_v17 = vsub.f32 %v1205_v42, %v133_v3  ;;  %v1403_v18 = vsub.f32 %v1193_v38, %v133_v3  ;;  %v217_v14 = vsel %vm55_vm0, %v178_v30, 0.0  ;;  %603 = vmatprep.subr.bf16.mxu0 %v976_v28  ;;  %946 = vmatprep.subr.bf16.mxu1 %v976_v28  ;;  %v990_v28 = vld [vmem:[%s1830_s3 + $0x80] ss:$8 sps:$4 sm:$0xff]  }
  0xaa   :  { %v1410_v20 = vsub.f32 %v1212_v44, %v134_v12  ;;  %v1413_v15 = vsub.f32 %v1198_v39, %v134_v12  ;;  %v83_v21 = vpop.xlane.xlu0 %82  ;;  %v218_v35 = vadd.f32 %v217_v14, %v177_v34  ;;  %v221_v42 = vsel %vm55_vm0, %v180_v13, 0.0  ;;  %v979_v13 = vld [vmem:[%s1830_s3 + $0x54] ss:$8 sps:$4 sm:$0xff]  }
  0xab   :  { %v127_v38 = vmul.f32 0.006802721, %v83_v21  ;;  %v87_v0 = vpop.xlane.xlu1 %86  ;;  %v193_v1 = vmul.f32 %v1400_v17, %v1400_v17  ;;  %v194_v2 = vmul.f32 %v1403_v18, %v1403_v18  ;;  %v222_v44 = vadd.f32 %v221_v42, %v179_v31 }
  0xac   :  { %247 = vadd.xlane.f32.xlu1 %v246_v36  ;;  %219 = vadd.xlane.f32.xlu0 %v218_v35  ;;  %v128_v39 = vmul.f32 0.006802721, %v87_v0  ;;  %v195_v43 = vmul.f32 %v1410_v20, %v1410_v20  ;;  %v196_v49 = vmul.f32 %v1413_v15, %v1413_v15  ;;  %v982_v0 = vld [vmem:[%s1830_s3 + $0x64] ss:$8 sps:$4 sm:$0xff]  }
  0xad   :  { %v1425_v26 = vsub.f32 %v1231_v50, %v127_v38  ;;  %v1428_v22 = vsub.f32 %v1219_v46, %v127_v38  ;;  %v249_v51 = vsel %vm55_vm0, %v194_v2, 0.0  ;;  %v978_v46 = vld [vmem:[%s1830_s3 + $0x40] ss:$8 sps:$4 sm:$0xff]  }
  0xae   :  { %v1435_v23 = vsub.f32 %v1238_v52, %v128_v39  ;;  %v1438_v53 = vsub.f32 %v1224_v47, %v128_v39  ;;  %v115_v5 = vpop.xlane.xlu0 %114  ;;  %v250_v61 = vadd.f32 %v249_v51, %v193_v1  ;;  %v253_v50 = vsel %vm55_vm0, %v196_v49, 0.0  ;;  %604 = vmatpush1.bf16.msra.mxu0 %v978_v46  ;;  %956 = vmatpush1.bf16.msra.mxu1 %v978_v46  ;;  %v984_v39 = vld [vmem:[%s1830_s3 + $0x60] ss:$8 sps:$4 sm:$0xff]   ;;  %v987_v49 = vld [vmem:[%s1830_s3 + $0x70] ss:$8 sps:$4 sm:$0xff]  }
  0xaf   :  { %v135_v10 = vmul.f32 0.006802721, %v115_v5  ;;  %v119_v11 = vpop.xlane.xlu1 %118  ;;  %v181_v3 = vmul.f32 %v1425_v26, %v1425_v26  ;;  %v182_v52 = vmul.f32 %v1428_v22, %v1428_v22  ;;  %v254_v9 = vadd.f32 %v253_v50, %v195_v43  ;;  %605 = vmatprep.subr.bf16.mxu0 %v979_v13  ;;  %947 = vmatprep.subr.bf16.mxu1 %v979_v13  ;;  %v985_v43 = vld [vmem:[%s1830_s3 + $0x74] ss:$8 sps:$4 sm:$0xff]   ;;  %v988_v51 = vld [vmem:[%s1830_s3 + $0x84] ss:$8 sps:$4 sm:$0xff]  }
  0xb0   :  { %223 = vadd.xlane.f32.xlu1 %v222_v44  ;;  %251 = vadd.xlane.f32.xlu0 %v250_v61  ;;  %v136_v47 = vmul.f32 0.006802721, %v119_v11  ;;  %v183_v34 = vmul.f32 %v1435_v23, %v1435_v23  ;;  %v184_v30 = vmul.f32 %v1438_v53, %v1438_v53  ;;  %v465_v5 = vld [vmem:[%s1830_s3 + $0x90] sm:$0x33]  ;;  %v1025_v50 = vmov 65535  }
  0xb1   :  { %v1453_v12 = vsub.f32 %v1257_v58, %v135_v10  ;;  %v1456_v36 = vsub.f32 %v1245_v54, %v135_v10  ;;  %v225_v31 = vsel %vm55_vm0, %v182_v52, 0.0  ;;  %v981_v54 = vld [vmem:[%s1830_s3 + $0x50] ss:$8 sps:$4 sm:$0xff]   ;;  %v901_v61 = vcombine.high %v465_v5, %v465_v5 }
  0xb2   :  { %v1463_v16 = vsub.f32 %v1264_v60, %v136_v47  ;;  %v1466_v14 = vsub.f32 %v1250_v55, %v136_v47  ;;  %v226_v19 = vadd.f32 %v225_v31, %v181_v3  ;;  %v229_v58 = vsel %vm55_vm0, %v184_v30, 0.0  ;;  %606 = vmatpush1.bf16.msra.mxu0 %v981_v54  ;;  %957 = vmatpush1.bf16.msra.mxu1 %v981_v54 }
  0xb3   :  { %v197_v21 = vmul.f32 %v1453_v12, %v1453_v12  ;;  %v198_v35 = vmul.f32 %v1456_v36, %v1456_v36  ;;  %v230_v60 = vadd.f32 %v229_v58, %v183_v34  ;;  %607 = vmatprep.subr.bf16.mxu0 %v982_v0  ;;  %948 = vmatprep.subr.bf16.mxu1 %v982_v0  ;;  %v587_v46 = vsel %vm585_vm1, 4294967295, %v1025_v50 }
  0xb4   :  { %255 = vadd.xlane.f32.xlu1 %v254_v9  ;;  %227 = vadd.xlane.f32.xlu0 %v226_v19  ;;  %v199_v55 = vmul.f32 %v1463_v16, %v1463_v16  ;;  %v200_v42 = vmul.f32 %v1466_v14, %v1466_v14  ;;  %v588_v10 = vsel %vm586_vm2, %v587_v46, 0  ;;  %v900_v11 = vcombine.low %v465_v5, %v465_v5  ;;  %v54_v5 = vld [vmem:[%s1832_s2] sm:$0x3] }
  0xb5   :  { %v257_v38 = vsel %vm55_vm0, %v198_v35, 0.0  ;;  %v593_v3 = vand.u32 %v901_v61, %v588_v10  ;;  %v346_v34 = vlaneseq }
  0xb6   :  { %v258_v1 = vadd.f32 %v257_v38, %v197_v21  ;;  %v261_v2 = vsel %vm55_vm0, %v200_v42, 0.0  ;;  %608 = vmatpush1.bf16.msra.mxu0 %v984_v39  ;;  %958 = vmatpush1.bf16.msra.mxu1 %v984_v39  ;;  %v590_v52 = vand.u32 %v900_v11, %v588_v10 }
  0xb7   :  { %v262_v44 = vadd.f32 %v261_v2, %v199_v55  ;;  %609 = vmatprep.subr.bf16.mxu0 %v985_v43  ;;  %949 = vmatprep.subr.bf16.mxu1 %v985_v43  ;;  %v347_v54 = vshrl.u32 %v346_v34, 7 }
  0xb8   :  { %231 = vadd.xlane.f32.xlu1 %v230_v60  ;;  %259 = vadd.xlane.f32.xlu0 %v258_v1 }
  0xb9   :  { %v348_v0 = vsub.s32 0, %v347_v54  ;;  %v352_v1 = vsub.s32 1, %v347_v54 }
  0xba   :  { %610 = vmatpush1.bf16.msra.mxu0 %v987_v49  ;;  %959 = vmatpush1.bf16.msra.mxu1 %v987_v49 }
  0xbb   :  { %611 = vmatprep.subr.bf16.mxu0 %v988_v51  ;;  %950 = vmatprep.subr.bf16.mxu1 %v988_v51 }
  0xbc   :  { %263 = vadd.xlane.f32.xlu1 %v262_v44  ;;  %v53_v44 = vld [vmem:[%s1831_s1] sm:$0x3] }
  0xbd   :  { %v1509_v61 = vrot.slane %v53_v44, %v348_v0  ;;  %v1511_v50 = vrot.slane %v53_v44, %v352_v1 }
  0xbe   :  { %612 = vmatpush1.bf16.msra.mxu0 %v990_v28  ;;  %960 = vmatpush1.bf16.msra.mxu1 %v990_v28 }
  0xbf   :  { %613 = vmatprep.subr.bf16.mxu0 %v593_v3  ;;  %951 = vmatprep.subr.bf16.mxu1 %v593_v3 }
  0xc2   :  { %614 = vmatpush1.bf16.msra.mxu0 %v590_v52  ;;  %961 = vmatpush1.bf16.msra.mxu1 %v590_v52 }
 0x129   :  { %v204_v47 = vpop.xlane.xlu0 %203 }
 0x12a   :  { %v265_v9 = vmul.f32 0.006802721, %v204_v47 }
 0x12c   :  { %v281_v30 = vadd.f32 1e-05, %v265_v9  ;;  %v1514_v9 = vrot.slane %v54_v5, %v352_v1 }
 0x12d   :  { %v208_v31 = vpop.xlane.xlu1 %207  ;;  %v236_v13 = vpop.xlane.xlu0 %235 }
 0x12e   :  { %993 = vrsqrt.f32 %v281_v30  ;;  %v266_v19 = vmul.f32 0.006802721, %v208_v31  ;;  %v273_v58 = vmul.f32 0.006802721, %v236_v13 }
 0x130   :  { %v282_v21 = vadd.f32 1e-05, %v266_v19  ;;  %v289_v35 = vadd.f32 1e-05, %v273_v58  ;;  %v1518_v19 = vrot.slane %v54_v5, %v348_v0 }
 0x131   :  { %v240_v60 = vpop.xlane.xlu1 %239  ;;  %v212_v55 = vpop.xlane.xlu0 %211 }
 0x132   :  { %995 = vrsqrt.f32 %v282_v21  ;;  %v274_v42 = vmul.f32 0.006802721, %v240_v60  ;;  %v267_v38 = vmul.f32 0.006802721, %v212_v55 }
 0x133   :  { %997 = vrsqrt.f32 %v289_v35 }
 0x134   :  { %v290_v2 = vadd.f32 1e-05, %v274_v42  ;;  %v283_v39 = vadd.f32 1e-05, %v267_v38 }
 0x135   :  { %v216_v43 = vpop.xlane.xlu1 %215  ;;  %v244_v49 = vpop.xlane.xlu0 %243 }
 0x136   :  { %999 = vrsqrt.f32 %v290_v2  ;;  %v268_v51 = vmul.f32 0.006802721, %v216_v43  ;;  %v275_v28 = vmul.f32 0.006802721, %v244_v49 }
 0x137   :  { %1001 = vrsqrt.f32 %v283_v39 }
 0x138   :  { %v994_v46 = vpop.eup %993  ;;  %v284_v10 = vadd.f32 1e-05, %v268_v51  ;;  %v291_v11 = vadd.f32 1e-05, %v275_v28 }
 0x139   :  { %v248_v3 = vpop.xlane.xlu1 %247  ;;  %v220_v52 = vpop.xlane.xlu0 %219  ;;  %v314_v47 = vmul.f32 %v994_v46, %v1292_v25  ;;  %v313_v34 = vmul.f32 %v994_v46, %v1289_v24 }
 0x13a   :  { %1003 = vrsqrt.f32 %v284_v10  ;;  %v276_v30 = vmul.f32 0.006802721, %v248_v3  ;;  %v269_v31 = vmul.f32 0.006802721, %v220_v52 }
 0x13b   :  { %1005 = vrsqrt.f32 %v291_v11  ;;  %v357_v13 = vmul.f32 %v1511_v50, %v314_v47  ;;  %v356_v58 = vmul.f32 %v1509_v61, %v313_v34 }
 0x13c   :  { %v996_v54 = vpop.eup %995  ;;  %v292_v21 = vadd.f32 1e-05, %v276_v30  ;;  %v285_v35 = vadd.f32 1e-05, %v269_v31 }
 0x13d   :  { %v998_v60 = vpop.eup %997  ;;  %v224_v55 = vpop.xlane.xlu1 %223  ;;  %v316_v42 = vmul.f32 %v996_v54, %v1312_v4  ;;  %v400_v24 = vadd.f32 %v1514_v9, %v357_v13  ;;  %v315_v38 = vmul.f32 %v996_v54, %v1309_v41  ;;  %v399_v43 = vadd.f32 %v1518_v19, %v356_v58 }
 0x13e   :  { %v252_v25 = vpop.xlane.xlu0 %251  ;;  %1007 = vrsqrt.f32 %v292_v21  ;;  %v270_v1 = vmul.f32 0.006802721, %v224_v55  ;;  %v330_v0 = vmul.f32 %v998_v60, %v1298_v29  ;;  %v329_v5 = vmul.f32 %v998_v60, %v1295_v27 }
 0x13f   :  { %v277_v2 = vmul.f32 0.006802721, %v252_v25  ;;  %1009 = vrsqrt.f32 %v285_v35  ;;  %v359_v39 = vmul.f32 %v1511_v50, %v316_v42  ;;  %v358_v44 = vmul.f32 %v1509_v61, %v315_v38 }
 0x140   :  { %v1000_v49 = vpop.eup %999  ;;  %v286_v51 = vadd.f32 1e-05, %v270_v1  ;;  %v373_v4 = vmul.f32 %v1511_v50, %v330_v0  ;;  %v372_v60 = vmul.f32 %v1509_v61, %v329_v5 }
 0x141   :  { %v293_v28 = vadd.f32 1e-05, %v277_v2  ;;  %v1002_v41 = vpop.eup %1001  ;;  %v256_v46 = vpop.xlane.xlu1 %255  ;;  %v402_v11 = vadd.f32 %v1514_v9, %v359_v39  ;;  %v401_v29 = vadd.f32 %v1518_v19, %v358_v44  ;;  %v332_v3 = vmul.f32 %v1000_v49, %v1319_v48 }
 0x142   :  { %v228_v10 = vpop.xlane.xlu0 %227  ;;  %v331_v52 = vmul.f32 %v1000_v49, %v1316_v45  ;;  %v318_v47 = vmul.f32 %v1002_v41, %v1334_v63  ;;  %1011 = vrsqrt.f32 %v286_v51  ;;  %v278_v34 = vmul.f32 0.006802721, %v256_v46 }
 0x143   :  { %v271_v30 = vmul.f32 0.006802721, %v228_v10  ;;  %1013 = vrsqrt.f32 %v293_v28  ;;  %v432_v31 = vpack.c.bf16 %v402_v11, %v400_v24  ;;  %v431_v13 = vpack.c.bf16 %v401_v29, %v399_v43 }
 0x144   :  { %v375_v27 = vmul.f32 %v1511_v50, %v332_v3  ;;  %v1004_v58 = vpop.eup %1003  ;;  %v294_v54 = vadd.f32 1e-05, %v278_v34  ;;  %v416_v35 = vadd.f32 %v1514_v9, %v373_v4  ;;  %v374_v42 = vmul.f32 %v1509_v61, %v331_v52 }
 0x145   :  { %v287_v21 = vadd.f32 1e-05, %v271_v30  ;;  %v1006_v48 = vpop.eup %1005  ;;  %v320_v45 = vmul.f32 %v1004_v58, %v1341_v8  ;;  %v232_v55 = vpop.xlane.xlu1 %231  ;;  %902 = vmatprep.mubr.msk.bf16.mxu0 %vm55_vm0, %v432_v31  ;;  %v361_v24 = vmul.f32 %v1511_v50, %v318_v47  ;;  %v415_v8 = vadd.f32 %v1518_v19, %v372_v60 }
 0x146   :  { %v260_v63 = vpop.xlane.xlu0 %259  ;;  %v418_v25 = vadd.f32 %v1514_v9, %v375_v27  ;;  %v334_v38 = vmul.f32 %v1006_v48, %v1356_v33  ;;  %1015 = vrsqrt.f32 %v294_v54  ;;  %v272_v1 = vmul.f32 0.006802721, %v232_v55  ;;  %628 = vmatmul.mubr.bf16.vlgmr.msra.gmra.mrb[0].mxu0 %v431_v13 }
 0x147   :  { %v279_v2 = vmul.f32 0.006802721, %v260_v63  ;;  %1017 = vrsqrt.f32 %v287_v21  ;;  %v417_v39 = vadd.f32 %v1518_v19, %v374_v42  ;;  %v363_v51 = vmul.f32 %v1511_v50, %v320_v45 }
 0x148   :  { %v440_v0 = vpack.c.bf16 %v418_v25, %v416_v35  ;;  %v1008_v44 = vpop.eup %1007  ;;  %v288_v43 = vadd.f32 1e-05, %v272_v1  ;;  %v404_v28 = vadd.f32 %v1514_v9, %v361_v24  ;;  %v317_v10 = vmul.f32 %v1002_v41, %v1331_v62 }
 0x149   :  { %v295_v49 = vadd.f32 1e-05, %v279_v2  ;;  %v1010_v4 = vpop.eup %1009  ;;  %v336_v33 = vmul.f32 %v1008_v44, %v1363_v40  ;;  %v264_v5 = vpop.xlane.xlu1 %263  ;;  %v439_v46 = vpack.c.bf16 %v417_v39, %v415_v8  ;;  %v319_v11 = vmul.f32 %v1004_v58, %v1338_v7 }
 0x14a   :  { %906 = vmatprep.mubr.msk.bf16.mxu1 %vm55_vm0, %v440_v0  ;;  %v322_v29 = vmul.f32 %v1010_v4, %v1378_v57  ;;  %1019 = vrsqrt.f32 %v288_v43  ;;  %v280_v3 = vmul.f32 0.006802721, %v264_v5  ;;  %v406_v52 = vadd.f32 %v1514_v9, %v363_v51 }
 0x14b   :  { %1021 = vrsqrt.f32 %v295_v49  ;;  %668 = vmatmul.mubr.bf16.vlgmr.msra.gmra.mrb[0].mxu1 %v439_v46  ;;  %v360_v47 = vmul.f32 %v1509_v61, %v317_v10  ;;  %v362_v40 = vmul.f32 %v1509_v61, %v319_v11  ;;  %v377_v34 = vmul.f32 %v1511_v50, %v334_v38 }
 0x14c   :  { %v1012_v30 = vpop.eup %1011  ;;  %v296_v31 = vadd.f32 1e-05, %v280_v3  ;;  %v434_v13 = vpack.c.bf16 %v406_v52, %v404_v28  ;;  %v379_v62 = vmul.f32 %v1511_v50, %v336_v33  ;;  %v333_v7 = vmul.f32 %v1006_v48, %v1353_v32 }
 0x14d   :  { %v1014_v57 = vpop.eup %1013  ;;  %v324_v41 = vmul.f32 %v1012_v30, %v1385_v59  ;;  %v403_v27 = vadd.f32 %v1518_v19, %v360_v47  ;;  %v405_v58 = vadd.f32 %v1518_v19, %v362_v40  ;;  %v420_v54 = vadd.f32 %v1514_v9, %v377_v34 }
 0x14e   :  { %v338_v21 = vmul.f32 %v1014_v57, %v1403_v18  ;;  %1023 = vrsqrt.f32 %v296_v31  ;;  %903 = vmatprep.mubr.msk.bf16.mxu0 %vm55_vm0, %v434_v13  ;;  %v422_v35 = vadd.f32 %v1514_v9, %v379_v62  ;;  %v335_v60 = vmul.f32 %v1008_v44, %v1360_v37 }
 0x14f   :  { %v433_v45 = vpack.c.bf16 %v405_v58, %v403_v27  ;;  %v376_v32 = vmul.f32 %v1509_v61, %v333_v7  ;;  %v365_v59 = vmul.f32 %v1511_v50, %v322_v29  ;;  %v367_v48 = vmul.f32 %v1511_v50, %v324_v41 }
 0x150   :  { %v1016_v55 = vpop.eup %1015  ;;  %v442_v63 = vpack.c.bf16 %v422_v35, %v420_v54  ;;  %v378_v25 = vmul.f32 %v1509_v61, %v335_v60  ;;  %v321_v18 = vmul.f32 %v1010_v4, %v1375_v56  ;;  %v323_v42 = vmul.f32 %v1012_v30, %v1382_v6 }
 0x151   :  { %v1018_v24 = vpop.eup %1017  ;;  %v340_v38 = vmul.f32 %v1016_v55, %v1413_v15  ;;  %638 = vmatmul.mubr.bf16.gmra.mrb[4].mxu0 %v433_v45  ;;  %v419_v37 = vadd.f32 %v1518_v19, %v376_v32  ;;  %v408_v1 = vadd.f32 %v1514_v9, %v365_v59  ;;  %v410_v2 = vadd.f32 %v1514_v9, %v367_v48 }
 0x152   :  { %v326_v0 = vmul.f32 %v1018_v24, %v1428_v22  ;;  %907 = vmatprep.mubr.msk.bf16.mxu1 %vm55_vm0, %v442_v63  ;;  %v421_v8 = vadd.f32 %v1518_v19, %v378_v25  ;;  %v364_v56 = vmul.f32 %v1509_v61, %v321_v18  ;;  %v366_v6 = vmul.f32 %v1509_v61, %v323_v42 }
 0x153   :  { %v436_v39 = vpack.c.bf16 %v410_v2, %v408_v1  ;;  %v381_v15 = vmul.f32 %v1511_v50, %v338_v21  ;;  %v383_v44 = vmul.f32 %v1511_v50, %v340_v38  ;;  %v337_v43 = vmul.f32 %v1014_v57, %v1400_v17 }
 0x154   :  { %v1020_v49 = vpop.eup %1019  ;;  %v441_v51 = vpack.c.bf16 %v421_v8, %v419_v37  ;;  %v407_v28 = vadd.f32 %v1518_v19, %v364_v56  ;;  %v409_v22 = vadd.f32 %v1518_v19, %v366_v6  ;;  %v339_v4 = vmul.f32 %v1016_v55, %v1410_v20 }
 0x155   :  { %v1022_v33 = vpop.eup %1021  ;;  %v328_v5 = vmul.f32 %v1020_v49, %v1438_v53  ;;  %904 = vmatprep.mubr.msk.bf16.mxu0 %vm55_vm0, %v436_v39  ;;  %v424_v46 = vadd.f32 %v1514_v9, %v381_v15  ;;  %v426_v10 = vadd.f32 %v1514_v9, %v383_v44  ;;  %v380_v11 = vmul.f32 %v1509_v61, %v337_v43 }
 0x156   :  { %v342_v17 = vmul.f32 %v1022_v33, %v1456_v36  ;;  %678 = vmatmul.mubr.bf16.gmra.mrb[4].mxu1 %v441_v51  ;;  %v435_v29 = vpack.c.bf16 %v409_v22, %v407_v28  ;;  %v382_v3 = vmul.f32 %v1509_v61, %v339_v4  ;;  %v369_v52 = vmul.f32 %v1511_v50, %v326_v0 }
 0x157   :  { %v444_v20 = vpack.c.bf16 %v426_v10, %v424_v46  ;;  %v423_v47 = vadd.f32 %v1518_v19, %v380_v11  ;;  %v371_v53 = vmul.f32 %v1511_v50, %v328_v5  ;;  %v325_v40 = vmul.f32 %v1018_v24, %v1425_v26 }
 0x158   :  { %v1024_v34 = vpop.eup %1023  ;;  %v425_v30 = vadd.f32 %v1518_v19, %v382_v3  ;;  %v412_v31 = vadd.f32 %v1514_v9, %v369_v52  ;;  %v327_v36 = vmul.f32 %v1020_v49, %v1435_v23  ;;  %v385_v13 = vmul.f32 %v1511_v50, %v342_v17 }
 0x159   :  { %v344_v62 = vmul.f32 %v1024_v34, %v1466_v14  ;;  %648 = vmatmul.mubr.bf16.gmra.mrb[8].mxu0 %v435_v29  ;;  %908 = vmatprep.mubr.msk.bf16.mxu1 %vm55_vm0, %v444_v20  ;;  %v414_v7 = vadd.f32 %v1514_v9, %v371_v53  ;;  %v368_v57 = vmul.f32 %v1509_v61, %v325_v40 }
 0x15a   :  { %v443_v41 = vpack.c.bf16 %v425_v30, %v423_v47  ;;  %v370_v26 = vmul.f32 %v1509_v61, %v327_v36  ;;  %v341_v27 = vmul.f32 %v1022_v33, %v1453_v12  ;;  %v343_v23 = vmul.f32 %v1024_v34, %v1463_v16 }
 0x15b   :  { %v438_v58 = vpack.c.bf16 %v414_v7, %v412_v31  ;;  %v387_v54 = vmul.f32 %v1511_v50, %v344_v62  ;;  %v411_v21 = vadd.f32 %v1518_v19, %v368_v57  ;;  %v428_v60 = vadd.f32 %v1514_v9, %v385_v13 }
 0x15c   :  { %v413_v14 = vadd.f32 %v1518_v19, %v370_v26  ;;  %v384_v35 = vmul.f32 %v1509_v61, %v341_v27  ;;  %v386_v32 = vmul.f32 %v1509_v61, %v343_v23 }
 0x15d   :  { %905 = vmatprep.mubr.msk.bf16.mxu0 %vm55_vm0, %v438_v58  ;;  %v430_v45 = vadd.f32 %v1514_v9, %v387_v54 }
 0x15e   :  { %688 = vmatmul.mubr.bf16.gmra.mrb[8].mxu1 %v443_v41  ;;  %v437_v12 = vpack.c.bf16 %v413_v14, %v411_v21  ;;  %v429_v50 = vadd.f32 %v1518_v19, %v386_v32  ;;  %v427_v16 = vadd.f32 %v1518_v19, %v384_v35 }
 0x15f   :  { %v446_v59 = vpack.c.bf16 %v430_v45, %v428_v60 }
 0x160   :  { %v445_v48 = vpack.c.bf16 %v429_v50, %v427_v16 }
 0x161   :  { %658 = vmatmul.mubr.bf16.gmra.mrb[12].mxu0 %v437_v12  ;;  %909 = vmatprep.mubr.msk.bf16.mxu1 %vm55_vm0, %v446_v59 }
 0x166   :  { %698 = vmatmul.mubr.bf16.gmra.mrb[12].mxu1 %v445_v48 }
 0x219   :  { %v629_v55 = vpop.f32.mrb[0].mxu0 }
 0x21a   :  { %v926_v63 = vpack.c.bf16 %v629_v55, %v629_v55  ;;  %v631_v25 = vpop.f32.mrb[1].mxu0 }
 0x21b   :  { %854 = vst.msk [vmem:[%s1833_s6] sm:$0xff] %vm853_vm3, %v631_v25  ;;  %v633_v61 = vpop.f32.mrb[2].mxu0 }
 0x21c   :  { %773 = vst.msk [vmem:[%s1834_s4] sm:$0xf] %vm772_vm4, %v926_v63  ;;  %v927_v9 = vpack.c.bf16 %v633_v61, %v633_v61  ;;  %789 = vrot.lane.b32.xlu0 %v926_v63, %s1026_s30  ;;  %v635_v19 = vpop.f32.mrb[3].mxu0 }
 0x21d   :  { %855 = vst.msk [vmem:[%s1833_s6 + $0x8] sm:$0xff] %vm853_vm3, %v635_v19 }
 0x21e   :  { %774 = vst.msk [vmem:[%s1834_s4 + $0x4] sm:$0xf] %vm772_vm4, %v927_v9  ;;  %v669_v18 = vpop.f32.mrb[0].mxu1  ;;  %791 = vrot.lane.b32.xlu1 %v927_v9, %s1026_s30 }
 0x21f   :  { %v934_v42 = vpack.c.bf16 %v669_v18, %v669_v18  ;;  %v671_v24 = vpop.f32.mrb[1].mxu1 }
 0x220   :  { %862 = vst.msk [vmem:[%s1833_s6 + $0x40] sm:$0xff] %vm853_vm3, %v671_v24  ;;  %v673_v38 = vpop.f32.mrb[2].mxu1 }
 0x221   :  { %781 = vst.msk [vmem:[%s1834_s4 + $0x20] sm:$0xf] %vm772_vm4, %v934_v42  ;;  %v935_v37 = vpack.c.bf16 %v673_v38, %v673_v38  ;;  %805 = vrot.lane.b32.xlu0 %v934_v42, %s1026_s30  ;;  %v675_v1 = vpop.f32.mrb[3].mxu1 }
 0x222   :  { %863 = vst.msk [vmem:[%s1833_s6 + $0x48] sm:$0xff] %vm853_vm3, %v675_v1 }
 0x223   :  { %782 = vst.msk [vmem:[%s1834_s4 + $0x24] sm:$0xf] %vm772_vm4, %v935_v37  ;;  %807 = vrot.lane.b32.xlu1 %v935_v37, %s1026_s30 }
 0x224   :  { %v639_v2 = vpop.f32.mrb[4].mxu0 }
 0x225   :  { %v928_v0 = vpack.c.bf16 %v639_v2, %v639_v2  ;;  %v641_v8 = vpop.f32.mrb[5].mxu0 }
 0x226   :  { %856 = vst.msk [vmem:[%s1833_s6 + $0x10] sm:$0xff] %vm853_vm3, %v641_v8  ;;  %v643_v56 = vpop.f32.mrb[6].mxu0 }
 0x227   :  { %775 = vst.msk [vmem:[%s1834_s4 + $0x8] sm:$0xf] %vm772_vm4, %v928_v0  ;;  %v929_v6 = vpack.c.bf16 %v643_v56, %v643_v56  ;;  %v645_v39 = vpop.f32.mrb[7].mxu0  ;;  %793 = vrot.lane.b32.xlu1 %v928_v0, %s1026_s30 }
 0x228   :  { %857 = vst.msk [vmem:[%s1833_s6 + $0x18] sm:$0xff] %vm853_vm3, %v645_v39 }
 0x229   :  { %776 = vst.msk [vmem:[%s1834_s4 + $0xc] sm:$0xf] %vm772_vm4, %v929_v6  ;;  %v679_v15 = vpop.f32.mrb[4].mxu1 }
 0x22a   :  { %v936_v44 = vpack.c.bf16 %v679_v15, %v679_v15  ;;  %v681_v43 = vpop.f32.mrb[5].mxu1 }
 0x22b   :  { %864 = vst.msk [vmem:[%s1833_s6 + $0x50] sm:$0xff] %vm853_vm3, %v681_v43  ;;  %v683_v49 = vpop.f32.mrb[6].mxu1  ;;  %795 = vrot.lane.b32.xlu1 %v929_v6, %s1026_s30 }
 0x22c   :  { %783 = vst.msk [vmem:[%s1834_s4 + $0x28] sm:$0xf] %vm772_vm4, %v936_v44  ;;  %v937_v51 = vpack.c.bf16 %v683_v49, %v683_v49  ;;  %809 = vrot.lane.b32.xlu0 %v936_v44, %s1026_s30  ;;  %v685_v28 = vpop.f32.mrb[7].mxu1  ;;  %v649_v22 = vpop.f32.mrb[8].mxu0 }
 0x22d   :  { %865 = vst.msk [vmem:[%s1833_s6 + $0x58] sm:$0xff] %vm853_vm3, %v685_v28  ;;  %v930_v4 = vpack.c.bf16 %v649_v22, %v649_v22  ;;  %v651_v33 = vpop.f32.mrb[9].mxu0 }
 0x22e   :  { %784 = vst.msk [vmem:[%s1834_s4 + $0x2c] sm:$0xf] %vm772_vm4, %v937_v51  ;;  %v653_v5 = vpop.f32.mrb[10].mxu0 }
 0x22f   :  { %858 = vst.msk [vmem:[%s1833_s6 + $0x20] sm:$0xff] %vm853_vm3, %v651_v33  ;;  %v931_v46 = vpack.c.bf16 %v653_v5, %v653_v5  ;;  %v655_v10 = vpop.f32.mrb[11].mxu0  ;;  %811 = vrot.lane.b32.xlu1 %v937_v51, %s1026_s30 }
 0x230   :  { %777 = vst.msk [vmem:[%s1834_s4 + $0x10] sm:$0xf] %vm772_vm4, %v930_v4  ;;  %797 = vrot.lane.b32.xlu0 %v930_v4, %s1026_s30 }
 0x231   :  { %859 = vst.msk [vmem:[%s1833_s6 + $0x28] sm:$0xff] %vm853_vm3, %v655_v10  ;;  %v689_v11 = vpop.f32.mrb[8].mxu1 }
 0x232   :  { %778 = vst.msk [vmem:[%s1834_s4 + $0x14] sm:$0xf] %vm772_vm4, %v931_v46  ;;  %v938_v17 = vpack.c.bf16 %v689_v11, %v689_v11  ;;  %v691_v29 = vpop.f32.mrb[9].mxu1 }
 0x233   :  { %866 = vst.msk [vmem:[%s1833_s6 + $0x60] sm:$0xff] %vm853_vm3, %v691_v29  ;;  %v693_v3 = vpop.f32.mrb[10].mxu1  ;;  %799 = vrot.lane.b32.xlu1 %v931_v46, %s1026_s30 }
 0x234   :  { %785 = vst.msk [vmem:[%s1834_s4 + $0x30] sm:$0xf] %vm772_vm4, %v938_v17  ;;  %v939_v52 = vpack.c.bf16 %v693_v3, %v693_v3  ;;  %813 = vrot.lane.b32.xlu0 %v938_v17, %s1026_s30  ;;  %v695_v20 = vpop.f32.mrb[11].mxu1  ;;  %v659_v47 = vpop.f32.mrb[12].mxu0 }
 0x235   :  { %867 = vst.msk [vmem:[%s1833_s6 + $0x68] sm:$0xff] %vm853_vm3, %v695_v20  ;;  %v932_v53 = vpack.c.bf16 %v659_v47, %v659_v47  ;;  %v661_v40 = vpop.f32.mrb[13].mxu0 }
 0x236   :  { %786 = vst.msk [vmem:[%s1834_s4 + $0x34] sm:$0xf] %vm772_vm4, %v939_v52  ;;  %v663_v34 = vpop.f32.mrb[14].mxu0 }
 0x237   :  { %860 = vst.msk [vmem:[%s1833_s6 + $0x30] sm:$0xff] %vm853_vm3, %v661_v40  ;;  %v933_v30 = vpack.c.bf16 %v663_v34, %v663_v34  ;;  %v665_v31 = vpop.f32.mrb[15].mxu0  ;;  %815 = vrot.lane.b32.xlu1 %v939_v52, %s1026_s30 }
 0x238   :  { %779 = vst.msk [vmem:[%s1834_s4 + $0x18] sm:$0xf] %vm772_vm4, %v932_v53  ;;  %801 = vrot.lane.b32.xlu0 %v932_v53, %s1026_s30 }
 0x239   :  { %861 = vst.msk [vmem:[%s1833_s6 + $0x38] sm:$0xff] %vm853_vm3, %v665_v31  ;;  %v699_v36 = vpop.f32.mrb[12].mxu1 }
 0x23a   :  { %780 = vst.msk [vmem:[%s1834_s4 + $0x1c] sm:$0xf] %vm772_vm4, %v933_v30  ;;  %v940_v13 = vpack.c.bf16 %v699_v36, %v699_v36  ;;  %v701_v62 = vpop.f32.mrb[13].mxu1 }
 0x23b   :  { %868 = vst.msk [vmem:[%s1833_s6 + $0x70] sm:$0xff] %vm853_vm3, %v701_v62  ;;  %v703_v7 = vpop.f32.mrb[14].mxu1  ;;  %803 = vrot.lane.b32.xlu1 %v933_v30, %s1026_s30 }
 0x23c   :  { %787 = vst.msk [vmem:[%s1834_s4 + $0x38] sm:$0xf] %vm772_vm4, %v940_v13  ;;  %v941_v57 = vpack.c.bf16 %v703_v7, %v703_v7  ;;  %817 = vrot.lane.b32.xlu0 %v940_v13, %s1026_s30  ;;  %v705_v41 = vpop.f32.mrb[15].mxu1 }
 0x23d   :  { %869 = vst.msk [vmem:[%s1833_s6 + $0x78] sm:$0xff] %vm853_vm3, %v705_v41 }
 0x23e   :  { %788 = vst.msk [vmem:[%s1834_s4 + $0x3c] sm:$0xf] %vm772_vm4, %v941_v57 }
 0x23f   :  { %819 = vrot.lane.b32.xlu1 %v941_v57, %s1026_s30 }
 0x28e   :  { %v790_v26 = vpop.permute.xlu0 %789 }
 0x28f   :  { %837 = vst.msk [vmem:[%s1835_s5] sm:$0xf] %vm772_vm4, %v790_v26 }
 0x290   :  { %v792_v27 = vpop.permute.xlu1 %791 }
 0x291   :  { %838 = vst.msk [vmem:[%s1835_s5 + $0x4] sm:$0xf] %vm772_vm4, %v792_v27 }
 0x293   :  { %v806_v58 = vpop.permute.xlu0 %805 }
 0x294   :  { %845 = vst.msk [vmem:[%s1835_s5 + $0x20] sm:$0xf] %vm772_vm4, %v806_v58 }
 0x295   :  { %v808_v54 = vpop.permute.xlu1 %807 }
 0x296   :  { %846 = vst.msk [vmem:[%s1835_s5 + $0x24] sm:$0xf] %vm772_vm4, %v808_v54 }
 0x299   :  { %v794_v23 = vpop.permute.xlu1 %793 }
 0x29a   :  { %839 = vst.msk [vmem:[%s1835_s5 + $0x8] sm:$0xf] %vm772_vm4, %v794_v23 }
 0x29d   :  { %v796_v21 = vpop.permute.xlu1 %795 }
 0x29e   :  { %v810_v14 = vpop.permute.xlu0 %809  ;;  %840 = vst.msk [vmem:[%s1835_s5 + $0xc] sm:$0xf] %vm772_vm4, %v796_v21 }
 0x29f   :  { %847 = vst.msk [vmem:[%s1835_s5 + $0x28] sm:$0xf] %vm772_vm4, %v810_v14 }
 0x2a1   :  { %v812_v35 = vpop.permute.xlu1 %811 }
 0x2a2   :  { %v798_v60 = vpop.permute.xlu0 %797  ;;  %848 = vst.msk [vmem:[%s1835_s5 + $0x2c] sm:$0xf] %vm772_vm4, %v812_v35 }
 0x2a3   :  { %841 = vst.msk [vmem:[%s1835_s5 + $0x10] sm:$0xf] %vm772_vm4, %v798_v60 }
 0x2a5   :  { %v800_v45 = vpop.permute.xlu1 %799 }
 0x2a6   :  { %v814_v32 = vpop.permute.xlu0 %813  ;;  %842 = vst.msk [vmem:[%s1835_s5 + $0x14] sm:$0xf] %vm772_vm4, %v800_v45 }
 0x2a7   :  { %849 = vst.msk [vmem:[%s1835_s5 + $0x30] sm:$0xf] %vm772_vm4, %v814_v32 }
 0x2a9   :  { %v816_v12 = vpop.permute.xlu1 %815 }
 0x2aa   :  { %v802_v59 = vpop.permute.xlu0 %801  ;;  %850 = vst.msk [vmem:[%s1835_s5 + $0x34] sm:$0xf] %vm772_vm4, %v816_v12 }
 0x2ab   :  { %843 = vst.msk [vmem:[%s1835_s5 + $0x18] sm:$0xf] %vm772_vm4, %v802_v59 }
 0x2ad   :  { %v804_v50 = vpop.permute.xlu1 %803 }
 0x2ae   :  { %v818_v16 = vpop.permute.xlu0 %817  ;;  %844 = vst.msk [vmem:[%s1835_s5 + $0x1c] sm:$0xf] %vm772_vm4, %v804_v50 }
 0x2af   :  { %851 = vst.msk [vmem:[%s1835_s5 + $0x38] sm:$0xf] %vm772_vm4, %v818_v16 }
 0x2b1   :  { %v820_v48 = vpop.permute.xlu1 %819 }
 0x2b2   :  { %852 = vst.msk [vmem:[%s1835_s5 + $0x3c] sm:$0xf] %vm772_vm4, %v820_v48 }

</bundles_post_ra>
